<compile_context>
chip_gen: v7x
topology: tpu7x:2x2x1
jax: 0.10.0
libtpu: 0.0.40
codegen_flags: <defaults>
</compile_context>

<pallas_src>
import functools
import math

import numpy as np
import jax
import jax.numpy as jnp
from jax.experimental import pallas as pl
from jax.experimental.pallas import tpu as pltpu

SCALE = 7  # nn.Upsample(scale_factor=7), mode='nearest'


def _round_up(x, m):
    return -(-x // m) * m


def _pool_weight(in_size: int, scale: int, k: int) -> np.ndarray:
    """Weights s.t. (Upsample(scale) then AvgPool(k)) == W @ x along one axis."""
    out_size = (in_size * scale) // k
    w = np.zeros((out_size, in_size), np.float32)
    for p in range(out_size):
        for i in range(p * k, p * k + k):
            w[p, i // scale] += 1.0
    return w / float(k)


def _maybe_buffered_spec(block_shape, index_map, buffers):
    """BlockSpec with deeper multi-buffering when supported (perf-only)."""
    if buffers is not None and buffers > 2:
        try:
            return pl.BlockSpec(block_shape, index_map,
                                pipeline_mode=pl.Buffered(buffers))
        except TypeError:  # pipeline_mode not available in this jax version
            pass
    return pl.BlockSpec(block_shape, index_map)


# --------------- Kernel 1: upsample(x7) + avgpool, B planes per grid step ---------
def _pool_kernel(x_ref, wrow_ref, wcolt_ref, o_ref, *, plane_batch, h):
    # Column pool as ONE flat MXU matmul over the whole plane batch (M = B*H).
    u = jnp.dot(x_ref[...], wcolt_ref[...],
                preferred_element_type=jnp.float32)            # [B*H, Wp] f32
    u = u.astype(x_ref.dtype)                                  # bf16: halves vreg/VMEM
    wr = wrow_ref[...]                                         # [Hp, H]
    # Row pool per plane on the Wp-narrow intermediate (static unroll).
    for i in range(plane_batch):
        o_ref[i] = jnp.dot(wr, u[i * h:(i + 1) * h, :],
                           preferred_element_type=jnp.float32)  # [Hp, Wp]


def _pick_plane_batch(nplanes, h, w, hp, wp, itemsize, budget_bytes):
    """Plane-batch b per grid step such that (b*h) % 8 == 0 and the live VMEM
    (double-buffered input/output + u + weights) fits the budget (safe for
    v5e's 16 MiB default scoped VMEM).  Prefers an even number of grid steps
    (balanced split over v7x's two TensorCores)."""
    need = 8 // math.gcd(h, 8)                       # b multiple of this
    per_plane = (2 * h * w * itemsize                # double-buffered input block
                 + h * wp * 4                        # u intermediate (f32 transient)
                 + 2 * hp * wp * 4)                  # double-buffered f32 output block
    fixed = 2 * (hp * h + w * wp) * itemsize         # double-buffered pool weights
    cap = max(need, ((budget_bytes - fixed) // per_plane) // need * need)
    b = int(min(cap, _round_up(nplanes, need)))
    grid = -(-nplanes // b)
    if grid > 1 and grid % 2 == 1:
        b2 = _round_up(-(-nplanes // (grid + 1)), need)
        if need <= b2 <= cap and -(-nplanes // b2) == grid + 1:
            b, grid = b2, grid + 1
    return b, grid * b


def upsample_avgpool(planes, wrow, wcol_t, *, vmem_budget_bytes=12 << 20):
    nplanes, h, w = planes.shape
    hp, wp = wrow.shape[0], wcol_t.shape[1]
    itemsize = jnp.dtype(planes.dtype).itemsize
    b, nplanes_pad = _pick_plane_batch(nplanes, h, w, hp, wp, itemsize,
                                       vmem_budget_bytes)
    if nplanes_pad != nplanes:
        # Zero-plane padding keeps (b*h) % 8 == 0 without ever requesting a
        # full-extent block larger than physical VMEM.
        planes = jnp.pad(planes, ((0, nplanes_pad - nplanes), (0, 0), (0, 0)))
    x2d = planes.reshape(nplanes_pad * h, w)          # glue reshape (XLA, contiguous)
    kernel = functools.partial(_pool_kernel, plane_batch=b, h=h)
    out = pl.pallas_call(
        kernel,
        out_shape=jax.ShapeDtypeStruct((nplanes_pad, hp, wp), jnp.float32),
        grid=(nplanes_pad // b,),
        in_specs=[
            pl.BlockSpec((b * h, w), lambda i: (i, 0)),
            pl.BlockSpec((hp, h), lambda i: (0, 0)),
            pl.BlockSpec((w, wp), lambda i: (0, 0)),
        ],
        out_specs=pl.BlockSpec((b, hp, wp), lambda i: (i, 0, 0)),
        compiler_params=pltpu.CompilerParams(
            dimension_semantics=("parallel",),
            vmem_limit_bytes=28 << 20),
    )(x2d, wrow, wcol_t)
    return out[:nplanes] if nplanes_pad != nplanes else out


# --------------- Kernel 2: K-tiled CLIP image projection (dual-core on v7x) -------
def _proj_kernel(flat_ref, wimg_ref, part_ref, acc_ref):
    k = pl.program_id(1)

    @pl.when(k == 0)
    def _init():
        acc_ref[...] = jnp.zeros_like(acc_ref)

    # Streaming K-tile of the image-embedding projection (bf16 in, f32 acc).
    acc_ref[...] += jnp.dot(flat_ref[...], wimg_ref[...],
                            preferred_element_type=jnp.float32)    # [N, D]

    @pl.when(k == pl.num_programs(1) - 1)
    def _finalize():
        part_ref[...] = acc_ref[...]


def clip_image_projection(flat, wimg, *, n_par, tk):
    n, f_pad = flat.shape
    _, d = wimg.shape
    assert f_pad % (n_par * tk) == 0
    kst = f_pad // (n_par * tk)          # K steps per core partition
    buffers = 3 if kst >= 3 else None    # deeper buffering on the wimg stream
    return pl.pallas_call(
        _proj_kernel,
        out_shape=jax.ShapeDtypeStruct((n_par, n, d), jnp.float32),
        grid=(n_par, kst),
        in_specs=[
            pl.BlockSpec((n, tk), lambda p, k: (0, p * kst + k)),
            _maybe_buffered_spec((tk, d), lambda p, k: (p * kst + k, 0), buffers),
        ],
        out_specs=pl.BlockSpec((None, n, d), lambda p, k: (p, 0, 0)),
        scratch_shapes=[pltpu.VMEM((n, d), jnp.float32)],
        compiler_params=pltpu.CompilerParams(
            dimension_semantics=("parallel", "arbitrary"),
            vmem_limit_bytes=32 << 20),
    )(flat, wimg)


# --------------- Kernel 3: partial-sum + normalize + logits + 1 - /100 ------------
def _make_epilogue_kernel(logit_scale):
    def kernel(part_ref, txt_nt_ref, o_ref):
        img = part_ref[0]                                           # [N, D]
        for i in range(1, part_ref.shape[0]):                       # sum core partials
            img = img + part_ref[i]
        img_n = img * jax.lax.rsqrt(
            jnp.sum(img * img, axis=-1, keepdims=True))
        # logits_per_image = logit_scale * img_n @ txt_n.T  (txt pre-normalized [D,T])
        logits = logit_scale * jnp.dot(img_n, txt_nt_ref[...],
                                       preferred_element_type=jnp.float32)
        o_ref[...] = 1.0 - logits * (1.0 / 100.0)

    return kernel


def clip_loss_epilogue(partials, txt_nt, *, logit_scale):
    p, n, d = partials.shape
    t = txt_nt.shape[1]
    return pl.pallas_call(
        _make_epilogue_kernel(float(logit_scale)),
        out_shape=jax.ShapeDtypeStruct((n, t), jnp.float32),
        grid=(1,),
        in_specs=[
            pl.BlockSpec((p, n, d), lambda i: (0, 0, 0)),
            pl.BlockSpec((d, t), lambda i: (0, 0)),
        ],
        out_specs=pl.BlockSpec((n, t), lambda i: (0, 0)),
    )(partials, txt_nt)


# --------------- Module-equivalent wrapper -----------------------------------------
class GlobalCLIPLoss:
    """Pallas port of GlobalCLIPLoss: 1 - logits_per_image / 100 on pooled images."""

    def __init__(self, wimg, stylegan_size=1024, logit_scale=100.0,
                 tk_max=4096, use_bf16=True):
        self.pool_k = stylegan_size // 32
        self.logit_scale = float(logit_scale)
        self.compute_dtype = jnp.bfloat16 if use_bf16 else jnp.float32
        f, _ = wimg.shape
        self.f = f
        # 128-aligned K-tile; bf16 tiles of up to 4096 fit every generation's
        # default scoped VMEM even triple-buffered.
        self.tk = min(int(tk_max), _round_up(f, 128))
        k_total = -(-f // self.tk)
        # Split the K stream across both v7x TensorCores when it is long enough
        # that rounding up to an even number of tiles is negligible.
        self.n_par = 2 if k_total >= 4 else 1
        k_total = _round_up(k_total, self.n_par)
        self.f_pad = k_total * self.tk
        wimg_p = jnp.asarray(wimg, jnp.float32)
        if self.f_pad != f:
            wimg_p = jnp.pad(wimg_p, ((0, self.f_pad - f), (0, 0)))
        self.wimg_p = wimg_p.astype(self.compute_dtype)   # bf16 stream, f32 acc
        self._pool_w_cache = {}  # hoisted pool-weight construction (per H, W)

    def _pool_weights(self, h, w):
        key = (h, w)
        if key not in self._pool_w_cache:
            # Pool weights are exact multiples of 1/pool_k with tiny numerators:
            # exactly representable in bf16, so the cast loses no precision.
            wrow = jnp.asarray(
                _pool_weight(h, SCALE, self.pool_k)).astype(self.compute_dtype)
            wcol_t = jnp.asarray(
                _pool_weight(w, SCALE, self.pool_k).T).astype(self.compute_dtype)
            self._pool_w_cache[key] = (wrow, wcol_t)
        return self._pool_w_cache[key]

    def __call__(self, image, text_emb):
        n, c, h, w = image.shape
        assert (h * SCALE) % self.pool_k == 0 and (w * SCALE) % self.pool_k == 0
        wrow, wcol_t = self._pool_weights(h, w)
        hp, wp = wrow.shape[0], wcol_t.shape[1]
        planes = image.reshape(n * c, h, w).astype(self.compute_dtype)
        pooled = upsample_avgpool(planes, wrow, wcol_t)          # f32 [NC, Hp, Wp]
        flat = pooled.reshape(n, c * hp * wp)                    # glue reshape (XLA)
        assert flat.shape[1] == self.f, "wimg rows must equal C*Hp*Wp"
        if self.f_pad != self.f:
            flat = jnp.pad(flat, ((0, 0), (0, self.f_pad - self.f)))
        flat = flat.astype(self.compute_dtype)
        partials = clip_image_projection(flat, self.wimg_p,
                                         n_par=self.n_par, tk=self.tk)
        # Normalize + transpose text once in the wrapper (tiny) so the in-kernel
        # logits matmul is a plain [N,D]@[D,T].
        txt = jnp.asarray(text_emb, jnp.float32)
        txt_nt = (txt / jnp.linalg.norm(txt, axis=-1, keepdims=True)).T
        return clip_loss_epilogue(partials, txt_nt, logit_scale=self.logit_scale)


if __name__ == "__main__":
    key = jax.random.PRNGKey(0)
    k1, k2, k3 = jax.random.split(key, 3)

    N, C, H, W = 2, 3, 32, 32          # small stand-in StyleGAN outputs
    D, T = 32, 2                       # synthetic CLIP embedding dim / #texts
    stylegan_size = 1024               # module default -> avg-pool kernel = 32
    pool_k = stylegan_size // 32
    Hp, Wp = (H * SCALE) // pool_k, (W * SCALE) // pool_k
    F = C * Hp * Wp

    image = jax.random.normal(k1, (N, C, H, W), jnp.float32)
    wimg = jax.random.normal(k2, (F, D), jnp.float32) * 0.05
    text_emb = jax.random.normal(k3, (T, D), jnp.float32)

    loss_mod = GlobalCLIPLoss(wimg, stylegan_size=stylegan_size)
    out = jax.block_until_ready(loss_mod(image, text_emb))

    # Pure-JAX reference: literal nearest-upsample x7 -> avg-pool k=32 ->
    # synthetic CLIP (linear image proj, L2 norm, logit_scale=100) -> 1 - /100.
    def ref(img, txt):
        up = jnp.repeat(jnp.repeat(img, SCALE, axis=2), SCALE, axis=3)
        n_, c_, hu, wu = up.shape
        pooled = up.reshape(n_, c_, hu // pool_k, pool_k,
                            wu // pool_k, pool_k).mean(axis=(3, 5))
        emb = pooled.reshape(n_, -1) @ wimg
        emb_n = emb / jnp.linalg.norm(emb, axis=-1, keepdims=True)
        txt_n = txt / jnp.linalg.norm(txt, axis=-1, keepdims=True)
        logits = 100.0 * emb_n @ txt_n.T
        return 1.0 - logits / 100.0

    # bf16 inputs + f32 accumulation vs the f32 reference -> bf16-level tolerance
    # (construct GlobalCLIPLoss(..., use_bf16=False) for ~1e-3 agreement).
    np.testing.assert_allclose(np.asarray(out),
                               np.asarray(ref(image, text_emb)),
                               rtol=1e-2, atol=5e-3)
    assert out.shape == (N, T) and out.dtype == jnp.float32
    print("KERNEL_OK")
</pallas_src>

<mosaic_0001>
module attributes {stable_mosaic.version = 11 : i64} {
  func.func @_pool_kernel(%arg0: i32, %arg1: memref<192x32xbf16, #tpu.memory_space<vmem>>, %arg2: memref<7x32xbf16, #tpu.memory_space<vmem>>, %arg3: memref<32x7xbf16, #tpu.memory_space<vmem>>, %arg4: memref<6x7x7xf32, #tpu.memory_space<vmem>>) attributes {dimension_semantics = [#tpu.dimension_semantics<parallel>], iteration_bounds = array<i64: 1>, scalar_prefetch = 0 : i64, scratch_operands = 0 : i64, tpu.core_type = #tpu.core_type<tc>, window_params = [{transform_indices = @transform_0, window_bounds = array<i64: 192, 32>}, {pipeline_mode = #tpu.pipeline_mode<synchronous>, transform_indices = @transform_1, window_bounds = array<i64: 7, 32>}, {pipeline_mode = #tpu.pipeline_mode<synchronous>, transform_indices = @transform_2, window_bounds = array<i64: 32, 7>}, {transform_indices = @transform_3, window_bounds = array<i64: 6, 7, 7>}]} {
    %c0 = arith.constant 0 : index
    %c0_0 = arith.constant 0 : index
    %0 = vector.load %arg1[%c0, %c0_0] : memref<192x32xbf16, #tpu.memory_space<vmem>>, vector<192x32xbf16>
    %c0_1 = arith.constant 0 : index
    %c0_2 = arith.constant 0 : index
    %1 = vector.load %arg3[%c0_1, %c0_2] : memref<32x7xbf16, #tpu.memory_space<vmem>>, vector<32x7xbf16>
    %cst = arith.constant dense<0.000000e+00> : vector<192x7xf32>
    %2 = tpu.matmul %0, %1, %cst {dimension_numbers = #tpu.dot_dimension_numbers<[1], [0], [0], [1], [0, 0, 1, 1], [], []>} : vector<192x32xbf16>, vector<32x7xbf16>, vector<192x7xf32> -> vector<192x7xf32>
    %3 = arith.truncf %2 : vector<192x7xf32> to vector<192x7xbf16>
    %c0_3 = arith.constant 0 : index
    %c0_4 = arith.constant 0 : index
    %4 = vector.load %arg2[%c0_3, %c0_4] : memref<7x32xbf16, #tpu.memory_space<vmem>>, vector<7x32xbf16>
    %5 = vector.extract_strided_slice %3 {offsets = [0, 0], sizes = [32, 7], strides = [1, 1]} : vector<192x7xbf16> to vector<32x7xbf16>
    %cst_5 = arith.constant dense<0.000000e+00> : vector<7x7xf32>
    %6 = tpu.matmul %4, %5, %cst_5 {dimension_numbers = #tpu.dot_dimension_numbers<[1], [0], [0], [1], [0, 0, 1, 1], [], []>} : vector<7x32xbf16>, vector<32x7xbf16>, vector<7x7xf32> -> vector<7x7xf32>
    %c0_6 = arith.constant 0 : index
    %c0_7 = arith.constant 0 : index
    %c0_8 = arith.constant 0 : index
    %7 = vector.load %arg4[%c0_6, %c0_7, %c0_8] : memref<6x7x7xf32, #tpu.memory_space<vmem>>, vector<1x7x7xf32>
    %8 = vector.shape_cast %7 : vector<1x7x7xf32> to vector<7x7xf32>
    %9 = vector.shape_cast %6 : vector<7x7xf32> to vector<1x7x7xf32>
    tpu.vector_store %arg4[%c0_6, %c0_7, %c0_8], %9 {strides = array<i32>} : memref<6x7x7xf32, #tpu.memory_space<vmem>>, vector<1x7x7xf32>,
    %10 = vector.extract_strided_slice %3 {offsets = [32, 0], sizes = [32, 7], strides = [1, 1]} : vector<192x7xbf16> to vector<32x7xbf16>
    %cst_9 = arith.constant dense<0.000000e+00> : vector<7x7xf32>
    %11 = tpu.matmul %4, %10, %cst_9 {dimension_numbers = #tpu.dot_dimension_numbers<[1], [0], [0], [1], [0, 0, 1, 1], [], []>} : vector<7x32xbf16>, vector<32x7xbf16>, vector<7x7xf32> -> vector<7x7xf32>
    %c1 = arith.constant 1 : index
    %c0_10 = arith.constant 0 : index
    %c0_11 = arith.constant 0 : index
    %12 = vector.load %arg4[%c1, %c0_10, %c0_11] : memref<6x7x7xf32, #tpu.memory_space<vmem>>, vector<1x7x7xf32>
    %13 = vector.shape_cast %12 : vector<1x7x7xf32> to vector<7x7xf32>
    %14 = vector.shape_cast %11 : vector<7x7xf32> to vector<1x7x7xf32>
    tpu.vector_store %arg4[%c1, %c0_10, %c0_11], %14 {strides = array<i32>} : memref<6x7x7xf32, #tpu.memory_space<vmem>>, vector<1x7x7xf32>,
    %15 = vector.extract_strided_slice %3 {offsets = [64, 0], sizes = [32, 7], strides = [1, 1]} : vector<192x7xbf16> to vector<32x7xbf16>
    %cst_12 = arith.constant dense<0.000000e+00> : vector<7x7xf32>
    %16 = tpu.matmul %4, %15, %cst_12 {dimension_numbers = #tpu.dot_dimension_numbers<[1], [0], [0], [1], [0, 0, 1, 1], [], []>} : vector<7x32xbf16>, vector<32x7xbf16>, vector<7x7xf32> -> vector<7x7xf32>
    %c2 = arith.constant 2 : index
    %c0_13 = arith.constant 0 : index
    %c0_14 = arith.constant 0 : index
    %17 = vector.load %arg4[%c2, %c0_13, %c0_14] : memref<6x7x7xf32, #tpu.memory_space<vmem>>, vector<1x7x7xf32>
    %18 = vector.shape_cast %17 : vector<1x7x7xf32> to vector<7x7xf32>
    %19 = vector.shape_cast %16 : vector<7x7xf32> to vector<1x7x7xf32>
    tpu.vector_store %arg4[%c2, %c0_13, %c0_14], %19 {strides = array<i32>} : memref<6x7x7xf32, #tpu.memory_space<vmem>>, vector<1x7x7xf32>,
    %20 = vector.extract_strided_slice %3 {offsets = [96, 0], sizes = [32, 7], strides = [1, 1]} : vector<192x7xbf16> to vector<32x7xbf16>
    %cst_15 = arith.constant dense<0.000000e+00> : vector<7x7xf32>
    %21 = tpu.matmul %4, %20, %cst_15 {dimension_numbers = #tpu.dot_dimension_numbers<[1], [0], [0], [1], [0, 0, 1, 1], [], []>} : vector<7x32xbf16>, vector<32x7xbf16>, vector<7x7xf32> -> vector<7x7xf32>
    %c3 = arith.constant 3 : index
    %c0_16 = arith.constant 0 : index
    %c0_17 = arith.constant 0 : index
    %22 = vector.load %arg4[%c3, %c0_16, %c0_17] : memref<6x7x7xf32, #tpu.memory_space<vmem>>, vector<1x7x7xf32>
    %23 = vector.shape_cast %22 : vector<1x7x7xf32> to vector<7x7xf32>
    %24 = vector.shape_cast %21 : vector<7x7xf32> to vector<1x7x7xf32>
    tpu.vector_store %arg4[%c3, %c0_16, %c0_17], %24 {strides = array<i32>} : memref<6x7x7xf32, #tpu.memory_space<vmem>>, vector<1x7x7xf32>,
    %25 = vector.extract_strided_slice %3 {offsets = [128, 0], sizes = [32, 7], strides = [1, 1]} : vector<192x7xbf16> to vector<32x7xbf16>
    %cst_18 = arith.constant dense<0.000000e+00> : vector<7x7xf32>
    %26 = tpu.matmul %4, %25, %cst_18 {dimension_numbers = #tpu.dot_dimension_numbers<[1], [0], [0], [1], [0, 0, 1, 1], [], []>} : vector<7x32xbf16>, vector<32x7xbf16>, vector<7x7xf32> -> vector<7x7xf32>
    %c4 = arith.constant 4 : index
    %c0_19 = arith.constant 0 : index
    %c0_20 = arith.constant 0 : index
    %27 = vector.load %arg4[%c4, %c0_19, %c0_20] : memref<6x7x7xf32, #tpu.memory_space<vmem>>, vector<1x7x7xf32>
    %28 = vector.shape_cast %27 : vector<1x7x7xf32> to vector<7x7xf32>
    %29 = vector.shape_cast %26 : vector<7x7xf32> to vector<1x7x7xf32>
    tpu.vector_store %arg4[%c4, %c0_19, %c0_20], %29 {strides = array<i32>} : memref<6x7x7xf32, #tpu.memory_space<vmem>>, vector<1x7x7xf32>,
    %30 = vector.extract_strided_slice %3 {offsets = [160, 0], sizes = [32, 7], strides = [1, 1]} : vector<192x7xbf16> to vector<32x7xbf16>
    %cst_21 = arith.constant dense<0.000000e+00> : vector<7x7xf32>
    %31 = tpu.matmul %4, %30, %cst_21 {dimension_numbers = #tpu.dot_dimension_numbers<[1], [0], [0], [1], [0, 0, 1, 1], [], []>} : vector<7x32xbf16>, vector<32x7xbf16>, vector<7x7xf32> -> vector<7x7xf32>
    %c5 = arith.constant 5 : index
    %c0_22 = arith.constant 0 : index
    %c0_23 = arith.constant 0 : index
    %32 = vector.load %arg4[%c5, %c0_22, %c0_23] : memref<6x7x7xf32, #tpu.memory_space<vmem>>, vector<1x7x7xf32>
    %33 = vector.shape_cast %32 : vector<1x7x7xf32> to vector<7x7xf32>
    %34 = vector.shape_cast %31 : vector<7x7xf32> to vector<1x7x7xf32>
    tpu.vector_store %arg4[%c5, %c0_22, %c0_23], %34 {strides = array<i32>} : memref<6x7x7xf32, #tpu.memory_space<vmem>>, vector<1x7x7xf32>,
    return
  }
  func.func @transform_0(%arg0: i32) -> (i32, i32) {
    %c0_i32 = arith.constant 0 : i32
    %c0_i32_0 = arith.constant 0 : i32
    return %arg0, %c0_i32 : i32, i32
  }
  func.func @transform_1(%arg0: i32) -> (i32, i32) {
    %c0_i32 = arith.constant 0 : i32
    %c0_i32_0 = arith.constant 0 : i32
    %c0_i32_1 = arith.constant 0 : i32
    return %c0_i32, %c0_i32_0 : i32, i32
  }
  func.func @transform_2(%arg0: i32) -> (i32, i32) {
    %c0_i32 = arith.constant 0 : i32
    %c0_i32_0 = arith.constant 0 : i32
    %c0_i32_1 = arith.constant 0 : i32
    return %c0_i32, %c0_i32_0 : i32, i32
  }
  func.func @transform_3(%arg0: i32) -> (i32, i32, i32) {
    %c0_i32 = arith.constant 0 : i32
    %c0_i32_0 = arith.constant 0 : i32
    %c0_i32_1 = arith.constant 0 : i32
    return %arg0, %c0_i32, %c0_i32_0 : i32, i32, i32
  }
}

</mosaic_0001>

<bundles_post_ra>
// kernel: tpu_custom_call.1
= control target key start
LH: loop header
LB: loop body
LE: loop exit
PB: predicated region body
PF: predicated region fallthrough
CT: control target
= control target key end

     0   :  { %vm116_vm0 = vcmask 261120   ;;  %s879_s0 = inlined_call_operand.vmem [shape: bf16[192,32], index: 0, kind: input, shape index: {}]   ;;  %s880_s1 = inlined_call_operand.vmem [shape: bf16[7,32], index: 1, kind: input, shape index: {}]   ;;  %s881_s2 = inlined_call_operand.vmem [shape: bf16[32,7], index: 2, kind: input, shape index: {}]   ;;  %s882_s3 = inlined_call_operand.hbm [shape: f32[6,7,7], index: 3, kind: output, shape index: {}]  }
   0x1   :  { %v711_v0 = vld [vmem:[%s881_s2] sm:$0xff]   ;;  %v712_v1 = vld [vmem:[%s881_s2 + $0x8] sm:$0xff]   ;;  %v715_v4 = vld [vmem:[%s879_s0 + $0x10] sm:$0xff]  }
   0x2   :  { %630 = vmatprep.subr.bf16.mxu0 %v711_v0  ;;  %v713_v2 = vld [vmem:[%s879_s0] sm:$0xff]   ;;  %v714_v3 = vld [vmem:[%s879_s0 + $0x8] sm:$0xff]   ;;  %v716_v5 = vld [vmem:[%s879_s0 + $0x18] sm:$0xff]  }
   0x3   :  { %631 = vmatpush3.bf16.msra.mxu0 %v711_v0  ;;  %634 = vmatprep.mubr.msk.bf16.mxu0 %vm116_vm0, %v713_v2 }
   0x4   :  { %632 = vmatprep.subr.bf16.mxu0 %v712_v1 }
   0x7   :  { %633 = vmatpush3.bf16.msra.mxu0 %v712_v1 }
   0xa   :  { %635 = vmatmul.mubr.msk.bf16.vlgmr.msra.gmra.mrb[0].mxu0 %vm116_vm0, %v714_v3 }
   0xb   :  { %638 = vmatprep.mubr.msk.bf16.mxu0 %vm116_vm0, %v715_v4 }
   0xc   :  { %8 = vsyncpa [#allocation3], 0  ;;  %v717_v6 = vld [vmem:[%s879_s0 + $0x20] sm:$0xff]   ;;  %v718_v7 = vld [vmem:[%s879_s0 + $0x28] sm:$0xff]   ;;  %v749_v14 = vmov 0.0   ;;  %vm750_vm1 = vmmov 0  }
   0xd   :  { %v719_v8 = vld [vmem:[%s879_s0 + $0x30] sm:$0xff]   ;;  %v720_v9 = vld [vmem:[%s879_s0 + $0x38] sm:$0xff]   ;;  %v721_v10 = vld [vmem:[%s879_s0 + $0x40] sm:$0xff]   ;;  %658 = vmatprep.subr.bf16.mxu1 %v749_v14  ;;  %662 = vmatprep.mubr.msk.bf16.mxu1 %vm750_vm1, %v749_v14  ;;  %vm338_vm2 = vcmask 55296  }
   0xe   :  { %v722_v11 = vld [vmem:[%s879_s0 + $0x48] sm:$0xff]   ;;  %v723_v12 = vld [vmem:[%s879_s0 + $0x50] sm:$0xff]   ;;  %v724_v13 = vld [vmem:[%s879_s0 + $0x58] sm:$0xff]  }
   0xf   :  { %v294_v24 = vld [vmem:[%s880_s1] sm:$0xf]  ;;  %s751_s1 = smov [#allocation2]  }
  0x10   :  { %s555_s13 = sshll.u32 %s751_s1, 4  ;;  %s556_s13 = int_to_ptr.vmem [resolvable:$true] %s555_s13 }
  0x11   :  { %s725_s14 = scalar_lea.vmem %s556_s13, 768  ;;  %p730_p1 = scmp.lt.s32.totalorder %s556_s13, %s556_s13 }
  0x12   :  { %639 = vmatmul.mubr.msk.bf16.gmra.mrb[4].mxu0 %vm116_vm0, %v716_v5  ;;  %p726_p0 = scmp.ne.s32.totalorder %s556_s13, %s725_s14  ;;  %p731_p2 = scmp.lt.s32.totalorder %s725_s14, %s725_s14 }
  0x13   :  { %642 = vmatprep.mubr.msk.bf16.mxu0 %vm116_vm0, %v717_v6 }
  0x14   :  { %p732_p3 = por %p731_p2, %p730_p1 }
  0x16   :  { %p733_p4 = pnand %p732_p3, %p726_p0 }
  0x1a   :  { %643 = vmatmul.mubr.msk.bf16.gmra.mrb[8].mxu0 %vm116_vm0, %v718_v7 }
  0x1b   :  { %646 = vmatprep.mubr.msk.bf16.mxu0 %vm116_vm0, %v719_v8 }
  0x22   :  { %647 = vmatmul.mubr.msk.bf16.gmra.mrb[12].mxu0 %vm116_vm0, %v720_v9 }
  0x23   :  { %650 = vmatprep.mubr.msk.bf16.mxu0 %vm116_vm0, %v721_v10 }
  0x2a   :  { %651 = vmatmul.mubr.msk.bf16.gmra.mrb[16].mxu0 %vm116_vm0, %v722_v11 }
  0x2b   :  { %654 = vmatprep.mubr.msk.bf16.mxu0 %vm116_vm0, %v723_v12 }
  0x32   :  { %655 = vmatmul.mubr.msk.bf16.gmra.mrb[20].mxu0 %vm116_vm0, %v724_v13 }
  0xdd   :  { %v636_v15 = vpop.f32.mrb[0].mxu0 }
  0xde   :  { %v187_v16 = vpop.f32.mrb[1].mxu0 }
  0xdf   :  { %v637_v17 = vpop.f32.mrb[2].mxu0 }
  0xe0   :  { %v283_v18 = vpack.c.bf16 %v637_v17, %v636_v15  ;;  %v190_v19 = vpop.f32.mrb[3].mxu0 }
  0xe1   :  { %v282_v20 = vpack.c.bf16 %v190_v19, %v187_v16 }
  0xe3   :  { %659 = vmatpush3.bf16.msra.mxu1 %v282_v20 }
  0xe4   :  { %660 = vmatprep.subr.bf16.mxu1 %v749_v14 }
  0xe5   :  { %v640_v21 = vpop.f32.mrb[4].mxu0 }
  0xe6   :  { %v203_v22 = vpop.f32.mrb[5].mxu0 }
  0xe7   :  { %v641_v23 = vpop.f32.mrb[6].mxu0  ;;  %661 = vmatpush3.bf16.msra.mxu1 %v283_v18 }
  0xe8   :  { %v285_v25 = vpack.c.bf16 %v641_v23, %v640_v21  ;;  %v206_v26 = vpop.f32.mrb[7].mxu0  ;;  %666 = vmatprep.subr.bf16.mxu1 %v749_v14 }
  0xe9   :  { %v284_v27 = vpack.c.bf16 %v206_v26, %v203_v22 }
  0xea   :  { %663 = vmatmul.mubr.msk.bf16.vlgmr.msra.gmra.mrb[0].mxu1 %vm116_vm0, %v294_v24 }
  0xeb   :  { %667 = vmatpush3.bf16.msra.mxu1 %v284_v27  ;;  %670 = vmatprep.mubr.msk.bf16.mxu1 %vm750_vm1, %v749_v14 }
  0xec   :  { %668 = vmatprep.subr.bf16.mxu1 %v749_v14 }
  0xed   :  { %v644_v28 = vpop.f32.mrb[8].mxu0 }
  0xee   :  { %v219_v29 = vpop.f32.mrb[9].mxu0 }
  0xef   :  { %v645_v30 = vpop.f32.mrb[10].mxu0  ;;  %669 = vmatpush3.bf16.msra.mxu1 %v285_v25 }
  0xf0   :  { %v287_v31 = vpack.c.bf16 %v645_v30, %v644_v28  ;;  %v222_v32 = vpop.f32.mrb[11].mxu0  ;;  %674 = vmatprep.subr.bf16.mxu1 %v749_v14 }
  0xf1   :  { %v286_v33 = vpack.c.bf16 %v222_v32, %v219_v29 }
  0xf2   :  { %671 = vmatmul.mubr.msk.bf16.vlgmr.msra.gmra.mrb[4].mxu1 %vm116_vm0, %v294_v24 }
  0xf3   :  { %675 = vmatpush3.bf16.msra.mxu1 %v286_v33  ;;  %678 = vmatprep.mubr.msk.bf16.mxu1 %vm750_vm1, %v749_v14 }
  0xf4   :  { %676 = vmatprep.subr.bf16.mxu1 %v749_v14 }
  0xf5   :  { %v648_v34 = vpop.f32.mrb[12].mxu0 }
  0xf6   :  { %v235_v35 = vpop.f32.mrb[13].mxu0 }
  0xf7   :  { %v649_v36 = vpop.f32.mrb[14].mxu0  ;;  %677 = vmatpush3.bf16.msra.mxu1 %v287_v31 }
  0xf8   :  { %v289_v37 = vpack.c.bf16 %v649_v36, %v648_v34  ;;  %v238_v38 = vpop.f32.mrb[15].mxu0  ;;  %682 = vmatprep.subr.bf16.mxu1 %v749_v14 }
  0xf9   :  { %v288_v39 = vpack.c.bf16 %v238_v38, %v235_v35 }
  0xfa   :  { %679 = vmatmul.mubr.msk.bf16.vlgmr.msra.gmra.mrb[8].mxu1 %vm116_vm0, %v294_v24 }
  0xfb   :  { %683 = vmatpush3.bf16.msra.mxu1 %v288_v39  ;;  %686 = vmatprep.mubr.msk.bf16.mxu1 %vm750_vm1, %v749_v14 }
  0xfc   :  { %684 = vmatprep.subr.bf16.mxu1 %v749_v14 }
  0xfd   :  { %v652_v40 = vpop.f32.mrb[16].mxu0 }
  0xfe   :  { %v251_v41 = vpop.f32.mrb[17].mxu0 }
  0xff   :  { %v653_v42 = vpop.f32.mrb[18].mxu0  ;;  %685 = vmatpush3.bf16.msra.mxu1 %v289_v37 }
 0x100   :  { %v291_v43 = vpack.c.bf16 %v653_v42, %v652_v40  ;;  %v254_v44 = vpop.f32.mrb[19].mxu0  ;;  %690 = vmatprep.subr.bf16.mxu1 %v749_v14 }
 0x101   :  { %v290_v45 = vpack.c.bf16 %v254_v44, %v251_v41 }
 0x102   :  { %687 = vmatmul.mubr.msk.bf16.vlgmr.msra.gmra.mrb[12].mxu1 %vm116_vm0, %v294_v24 }
 0x103   :  { %691 = vmatpush3.bf16.msra.mxu1 %v290_v45  ;;  %694 = vmatprep.mubr.msk.bf16.mxu1 %vm750_vm1, %v749_v14 }
 0x104   :  { %692 = vmatprep.subr.bf16.mxu1 %v749_v14 }
 0x105   :  { %v656_v46 = vpop.f32.mrb[20].mxu0 }
 0x106   :  { %v267_v47 = vpop.f32.mrb[21].mxu0 }
 0x107   :  { %v657_v48 = vpop.f32.mrb[22].mxu0  ;;  %693 = vmatpush3.bf16.msra.mxu1 %v291_v43 }
 0x108   :  { %v293_v49 = vpack.c.bf16 %v657_v48, %v656_v46  ;;  %v270_v50 = vpop.f32.mrb[23].mxu0  ;;  %698 = vmatprep.subr.bf16.mxu1 %v749_v14 }
 0x109   :  { %v292_v51 = vpack.c.bf16 %v270_v50, %v267_v47 }
 0x10a   :  { %695 = vmatmul.mubr.msk.bf16.vlgmr.msra.gmra.mrb[16].mxu1 %vm116_vm0, %v294_v24 }
 0x10b   :  { %699 = vmatpush3.bf16.msra.mxu1 %v292_v51  ;;  %702 = vmatprep.mubr.msk.bf16.mxu1 %vm750_vm1, %v749_v14 }
 0x10c   :  { %700 = vmatprep.subr.bf16.mxu1 %v749_v14 }
 0x10f   :  { %701 = vmatpush3.bf16.msra.mxu1 %v293_v49 }
 0x112   :  { %703 = vmatmul.mubr.msk.bf16.vlgmr.msra.gmra.mrb[20].mxu1 %vm116_vm0, %v294_v24 }
 0x1bd   :  { %v332_v52 = vpop.f32.mrb[0].mxu1 }
 0x1be   :  { %339 = vst.msk [vmem:[#allocation2] sm:$0x7f] %vm338_vm2, %v332_v52  ;;  %v664_v53 = vpop.f32.mrb[1].mxu1 }
 0x1bf   :  { %v335_v54 = vpop.f32.mrb[2].mxu1 }
 0x1c0   :  { %v665_v55 = vpop.f32.mrb[3].mxu1 }
 0x1c5   :  { %v374_v56 = vpop.f32.mrb[4].mxu1 }
 0x1c6   :  { %381 = vst.msk [vmem:[#allocation2 + $0x8] sm:$0x7f] %vm338_vm2, %v374_v56  ;;  %v672_v57 = vpop.f32.mrb[5].mxu1 }
 0x1c7   :  { %v377_v58 = vpop.f32.mrb[6].mxu1 }
 0x1c8   :  { %v673_v59 = vpop.f32.mrb[7].mxu1 }
 0x1cd   :  { %v416_v60 = vpop.f32.mrb[8].mxu1 }
 0x1ce   :  { %423 = vst.msk [vmem:[#allocation2 + $0x10] sm:$0x7f] %vm338_vm2, %v416_v60  ;;  %v680_v61 = vpop.f32.mrb[9].mxu1 }
 0x1cf   :  { %v419_v62 = vpop.f32.mrb[10].mxu1 }
 0x1d0   :  { %v681_v63 = vpop.f32.mrb[11].mxu1 }
 0x1d5   :  { %v458_v0 = vpop.f32.mrb[12].mxu1 }
 0x1d6   :  { %465 = vst.msk [vmem:[#allocation2 + $0x18] sm:$0x7f] %vm338_vm2, %v458_v0  ;;  %v688_v1 = vpop.f32.mrb[13].mxu1 }
 0x1d7   :  { %v461_v2 = vpop.f32.mrb[14].mxu1 }
 0x1d8   :  { %v689_v3 = vpop.f32.mrb[15].mxu1 }
 0x1dd   :  { %v500_v4 = vpop.f32.mrb[16].mxu1 }
 0x1de   :  { %507 = vst.msk [vmem:[#allocation2 + $0x20] sm:$0x7f] %vm338_vm2, %v500_v4  ;;  %v696_v5 = vpop.f32.mrb[17].mxu1 }
 0x1df   :  { %v503_v6 = vpop.f32.mrb[18].mxu1 }
 0x1e0   :  { %v697_v7 = vpop.f32.mrb[19].mxu1 }
 0x1e5   :  { %v542_v8 = vpop.f32.mrb[20].mxu1 }
 0x1e6   :  { %549 = vst.msk [vmem:[#allocation2 + $0x28] sm:$0x7f] %vm338_vm2, %v542_v8  ;;  %v704_v9 = vpop.f32.mrb[21].mxu1 }
 0x1e7   :  { %v545_v10 = vpop.f32.mrb[22].mxu1 }
 0x1e8   :  { %736 = shalt.err (!%p733_p4)
}
 0x1e9   :  { %s737_s17 = scalar_lea.hbm %s882_s3, 768 }
 0x1ea   :  { %p738_p5 = scmp.ne.s32.totalorder %s882_s3, %s737_s17  ;;  %p741_p6 = scmp.lt.u32.totalorder %s737_s17, %s882_s3 }
 0x1ec   :  { %p743_p7 = pnand %p741_p6, %p738_p5 }
 0x1ee   :  { %746 = shalt.err (!%p743_p7)
}
 0x1ef   :  { %s752_s2 = smov 128   ;;  %s753_s22 = smov 8   ;;  %v705_v11 = vpop.f32.mrb[23].mxu1 }
 0x1f0   :  { %561 = dma.vmem_to_hbm [thread:$0]  %s556_s13, 768, %s882_s3, [#allocation3], %s752_s2, %s752_s2, %s753_s22  }
 0x1f1   :  { %747 = dma.done.wait [#allocation3], 768  }
 0x1f2   :  { %748 = vsyncadd [#allocation3], 4294966528 }
 0x1f3   :  { %565 = vsyncpa [#allocation3], 1 }

</bundles_post_ra>
